<compile_context>
chip_gen: v6e
topology: v6e:2x2x1
jax: 0.10.0
libtpu: 0.0.40
codegen_flags: <defaults>
</compile_context>

<pallas_src>
import functools
import math
import numpy as np

import jax
import jax.numpy as jnp
from jax.experimental import pallas as pl
from jax.experimental.pallas import tpu as pltpu


VMEM_LIMIT = 64 * 1024 * 1024          # explicit scoped-VMEM cap (<= physical on all gens)
MATMUL_DTYPE = jnp.bfloat16            # MXU operand dtype (accumulate in f32)


def _ceil_to(x, m):
    return ((x + m - 1) // m) * m


# ----------------------------------------------------------------------------
# Fused linear kernel:  [LayerNorm] -> x @ W [+ b] [-> exact GELU] [+ residual]
# ----------------------------------------------------------------------------
def fused_linear(x, w, b=None, *, ln=None, gelu=False, residual=None, ln_eps=1e-5):
    """x: (M, K) f32; w: (K, N) f32 (cast to bf16 for the MXU); returns (M, N) f32.
    ln: optional (gamma, beta) applied per row of x before the matmul.
    residual: optional (M, N) f32 added in the epilogue."""
    M, K = x.shape
    N = w.shape[1]
    has_ln = ln is not None
    has_bias = b is not None
    has_res = residual is not None

    # M tiling: large tiles for HBM roofline, but never pad a small M up to 512.
    TM = 512 if M >= 512 else _ceil_to(max(M, 8), 8)
    Mp = _ceil_to(M, TM)
    # N tiling: stream big weights in 256-wide tiles (MXU-friendly on v6e/v7x and
    # keeps double-buffered weight blocks under the v7x scoped-VMEM limit).
    # Full K per block (needed for the fused LayerNorm).
    # TODO(synk): add K-tiling + f32 VMEM accumulator for very large K (breaks LN fusion).
    TN = 256 if (N > 512 and N % 256 == 0) else N

    xp = x if Mp == M else jnp.pad(x, ((0, Mp - M), (0, 0)))
    w_lo = w.astype(MATMUL_DTYPE)

    operands = [xp]
    in_specs = [pl.BlockSpec((TM, K), lambda i, j: (i, 0))]
    if has_ln:
        g, beta = ln
        operands += [g.reshape(1, K), beta.reshape(1, K)]
        in_specs += [pl.BlockSpec((1, K), lambda i, j: (0, 0)),
                     pl.BlockSpec((1, K), lambda i, j: (0, 0))]
    operands.append(w_lo)
    in_specs.append(pl.BlockSpec((K, TN), lambda i, j: (0, j)))
    if has_bias:
        operands.append(b.reshape(1, N))
        in_specs.append(pl.BlockSpec((1, TN), lambda i, j: (0, j)))
    if has_res:
        rp = residual if Mp == M else jnp.pad(residual, ((0, Mp - M), (0, 0)))
        operands.append(rp)
        in_specs.append(pl.BlockSpec((TM, TN), lambda i, j: (i, j)))

    def kernel(*refs):
        refs = list(refs)
        x_ref = refs.pop(0)
        if has_ln:
            g_ref = refs.pop(0)
            bta_ref = refs.pop(0)
        w_ref = refs.pop(0)
        b_ref = refs.pop(0) if has_bias else None
        r_ref = refs.pop(0) if has_res else None
        o_ref = refs.pop(0)

        xv = x_ref[...].astype(jnp.float32)
        if has_ln:
            mu = jnp.mean(xv, axis=-1, keepdims=True)
            xc = xv - mu
            var = jnp.mean(xc * xc, axis=-1, keepdims=True)
            xv = xc * jax.lax.rsqrt(var + ln_eps) * g_ref[...] + bta_ref[...]
        acc = jnp.dot(xv.astype(MATMUL_DTYPE), w_ref[...],
                      preferred_element_type=jnp.float32)
        if has_bias:
            acc = acc + b_ref[...]
        if gelu:
            # exact erf GELU (matches nn.GELU() default)
            acc = 0.5 * acc * (1.0 + jax.lax.erf(acc * (1.0 / math.sqrt(2.0))))
        if has_res:
            acc = acc + r_ref[...]
        o_ref[...] = acc.astype(o_ref.dtype)

    out = pl.pallas_call(
        kernel,
        out_shape=jax.ShapeDtypeStruct((Mp, N), jnp.float32),
        grid=(Mp // TM, N // TN),
        in_specs=in_specs,
        out_specs=pl.BlockSpec((TM, TN), lambda i, j: (i, j)),
        compiler_params=pltpu.CompilerParams(
            dimension_semantics=("parallel", "parallel"),
            vmem_limit_bytes=VMEM_LIMIT),
    )(*operands)
    return out[:M] if Mp != M else out


# ----------------------------------------------------------------------------
# Standalone LayerNorm (patch-embed norm, per-stage output norms, fallback path)
# ----------------------------------------------------------------------------
def _layernorm_kernel(x_ref, g_ref, b_ref, o_ref, *, eps):
    x = x_ref[...].astype(jnp.float32)
    mu = jnp.mean(x, axis=-1, keepdims=True)
    xc = x - mu
    var = jnp.mean(xc * xc, axis=-1, keepdims=True)
    o_ref[...] = (xc * jax.lax.rsqrt(var + eps) * g_ref[...] + b_ref[...]).astype(o_ref.dtype)


def layernorm_pallas(x, gamma, beta, eps=1e-5):
    M, C = x.shape
    TM = 512 if M >= 512 else _ceil_to(max(M, 8), 8)
    Mp = _ceil_to(M, TM)
    xp = x if Mp == M else jnp.pad(x, ((0, Mp - M), (0, 0)))
    out = pl.pallas_call(
        functools.partial(_layernorm_kernel, eps=eps),
        out_shape=jax.ShapeDtypeStruct((Mp, C), jnp.float32),
        grid=(Mp // TM,),
        in_specs=[
            pl.BlockSpec((TM, C), lambda i: (i, 0)),
            pl.BlockSpec((1, C), lambda i: (0, 0)),
            pl.BlockSpec((1, C), lambda i: (0, 0)),
        ],
        out_specs=pl.BlockSpec((TM, C), lambda i: (i, 0)),
        compiler_params=pltpu.CompilerParams(
            dimension_semantics=("parallel",),
            vmem_limit_bytes=VMEM_LIMIT),
    )(xp, gamma.reshape(1, C), beta.reshape(1, C))
    return out[:M] if Mp != M else out


# ----------------------------------------------------------------------------
# Window attention core: one grid step = all windows * all heads of one image
# ----------------------------------------------------------------------------
def _win_attn_kernel(q_ref, k_ref, v_ref, bm_ref, o_ref, *, scale):
    q = (q_ref[0].astype(jnp.float32) * scale).astype(MATMUL_DTYPE)      # (G, N, hd)
    k = k_ref[0].astype(MATMUL_DTYPE)
    v = v_ref[0].astype(MATMUL_DTYPE)
    s = jnp.einsum('gnd,gmd->gnm', q, k,
                   preferred_element_type=jnp.float32)                    # (G, N, N)
    s = s + bm_ref[...]                                                   # rel-pos bias + shift mask
    s = s - jnp.max(s, axis=-1, keepdims=True)
    p = jnp.exp(s)
    l = jnp.sum(p, axis=-1, keepdims=True)
    o = jnp.einsum('gnm,gmd->gnd', p.astype(MATMUL_DTYPE), v,
                   preferred_element_type=jnp.float32)                    # (G, N, hd)
    o_ref[0] = (o * pl.reciprocal(l, approx=True)).astype(o_ref.dtype)


def window_attention_core(q, k, v, bm, scale):
    """q,k,v: (B, G, N, hd) with G = nW*nH; bm: (G, N, N) combined bias+mask."""
    B, G, N, hd = q.shape
    return pl.pallas_call(
        functools.partial(_win_attn_kernel, scale=scale),
        out_shape=jax.ShapeDtypeStruct((B, G, N, hd), jnp.float32),
        grid=(B,),
        in_specs=[
            pl.BlockSpec((1, G, N, hd), lambda b: (b, 0, 0, 0)),
            pl.BlockSpec((1, G, N, hd), lambda b: (b, 0, 0, 0)),
            pl.BlockSpec((1, G, N, hd), lambda b: (b, 0, 0, 0)),
            pl.BlockSpec((G, N, N), lambda b: (0, 0, 0)),
        ],
        out_specs=pl.BlockSpec((1, G, N, hd), lambda b: (b, 0, 0, 0)),
        compiler_params=pltpu.CompilerParams(
            dimension_semantics=("parallel",),
            vmem_limit_bytes=VMEM_LIMIT),
    )(q, k, v, bm)


# ----------------------------------------------------------------------------
# JAX glue (window partition/reverse, rolls, module composition)
# ----------------------------------------------------------------------------
def window_partition(x, ws):
    B, H, W, C = x.shape
    x = x.reshape(B, H // ws, ws, W // ws, ws, C)
    return x.transpose(0, 1, 3, 2, 4, 5).reshape(-1, ws, ws, C)


def window_reverse(windows, ws, H, W):
    B = windows.shape[0] // (H * W // ws // ws)
    x = windows.reshape(B, H // ws, W // ws, ws, ws, -1)
    return x.transpose(0, 1, 3, 2, 4, 5).reshape(B, H, W, -1)


def make_relative_position_index(ws):
    coords = np.stack(np.meshgrid(np.arange(ws), np.arange(ws), indexing='ij'))
    coords_flatten = coords.reshape(2, -1)
    rel = coords_flatten[:, :, None] - coords_flatten[:, None, :]
    rel = rel.transpose(1, 2, 0).astype(np.int64)
    rel[:, :, 0] += ws - 1
    rel[:, :, 1] += ws - 1
    rel[:, :, 0] *= 2 * ws - 1
    return rel.sum(-1).astype(np.int32)                                   # (N, N)


def compute_attn_mask(H, W, window_size, shift_size):
    Hp = int(np.ceil(H / window_size)) * window_size
    Wp = int(np.ceil(W / window_size)) * window_size
    img_mask = np.zeros((1, Hp, Wp, 1), np.float32)
    h_slices = (slice(0, -window_size), slice(-window_size, -shift_size), slice(-shift_size, None))
    w_slices = (slice(0, -window_size), slice(-window_size, -shift_size), slice(-shift_size, None))
    cnt = 0
    for h in h_slices:
        for w in w_slices:
            img_mask[:, h, w, :] = cnt
            cnt += 1
    ws = window_size
    mw = img_mask.reshape(1, Hp // ws, ws, Wp // ws, ws, 1)
    mw = mw.transpose(0, 1, 3, 2, 4, 5).reshape(-1, ws * ws)              # (nW, N)
    attn_mask = mw[:, None, :] - mw[:, :, None]                           # (nW, N, N)
    attn_mask = np.where(attn_mask != 0, -100.0, 0.0).astype(np.float32)
    return jnp.asarray(attn_mask)


def swin_block_fwd(p, x, H, W, mask_matrix, num_heads, window_size, shift_size):
    B, L, C = x.shape
    ws = window_size
    nH = num_heads
    hd = C // nH
    N = ws * ws
    scale = hd ** (-0.5)
    ap = p['attn']

    pad_r = (ws - W % ws) % ws
    pad_b = (ws - H % ws) % ws
    Hp, Wp = H + pad_b, W + pad_r
    nW = (Hp // ws) * (Wp // ws)
    G = nW * nH

    # Combined rel-pos-bias (+shift mask) table: one (N, N) slab per (window, head).
    rpb = ap['rpb']                                                       # (nH, N, N)
    if shift_size > 0:
        bm = rpb[None, :, :, :] + mask_matrix[:, None, :, :]              # (nW, nH, N, N)
    else:
        bm = jnp.broadcast_to(rpb[None, :, :, :], (nW, nH, N, N))
    bm = bm.reshape(G, N, N)

    shortcut = x
    fast = (pad_r == 0 and pad_b == 0)

    if fast:
        # Fused fast path: window-partition the *un-normed* tokens; norm1 is fused
        # into the qkv matmul, and the first residual into the proj matmul.
        xi = x.reshape(B, H, W, C)
        if shift_size > 0:
            xi = jnp.roll(xi, shift=(-shift_size, -shift_size), axis=(1, 2))
        x_win = window_partition(xi, ws).reshape(-1, N, C)                # (B_, N, C)
        B_ = x_win.shape[0]
        x_win_flat = x_win.reshape(B_ * N, C)
        qkv = fused_linear(x_win_flat, ap['qkv_w'], ap['qkv_b'],
                           ln=(p['norm1_g'], p['norm1_b']))
    else:
        # General path (spatial padding present): LayerNorm outside so padded
        # tokens enter attention as exact zeros, matching the PyTorch module.
        xn = layernorm_pallas(x.reshape(B * L, C), p['norm1_g'], p['norm1_b'])
        xn = xn.reshape(B, H, W, C)
        xn = jnp.pad(xn, ((0, 0), (0, pad_b), (0, pad_r), (0, 0)))
        if shift_size > 0:
            xn = jnp.roll(xn, shift=(-shift_size, -shift_size), axis=(1, 2))
        x_win = window_partition(xn, ws).reshape(-1, N, C)
        B_ = x_win.shape[0]
        x_win_flat = x_win.reshape(B_ * N, C)
        qkv = fused_linear(x_win_flat, ap['qkv_w'], ap['qkv_b'])

    # Head split: (B_*N, 3C) -> (3, B, nW*nH, N, hd)   (XLA glue transposes)
    qkv = qkv.reshape(B, nW, N, 3, nH, hd).transpose(3, 0, 1, 4, 2, 5).reshape(3, B, G, N, hd)
    q, k, v = qkv[0], qkv[1], qkv[2]

    o = window_attention_core(q, k, v, bm, scale)                         # (B, G, N, hd)
    o = o.reshape(B, nW, nH, N, hd).transpose(0, 1, 3, 2, 4).reshape(B_ * N, C)

    if fast:
        y = fused_linear(o, ap['proj_w'], ap['proj_b'], residual=x_win_flat)
        y = y.reshape(-1, ws, ws, C)
        yr = window_reverse(y, ws, Hp, Wp)
        if shift_size > 0:
            yr = jnp.roll(yr, shift=(shift_size, shift_size), axis=(1, 2))
        x1 = yr.reshape(B, L, C)
    else:
        y = fused_linear(o, ap['proj_w'], ap['proj_b'])
        y = y.reshape(-1, ws, ws, C)
        yr = window_reverse(y, ws, Hp, Wp)
        if shift_size > 0:
            yr = jnp.roll(yr, shift=(shift_size, shift_size), axis=(1, 2))
        yr = yr[:, :H, :W, :]
        x1 = shortcut + yr.reshape(B, L, C)

    # MLP: norm2+fc1+GELU fused; fc2+residual fused.
    x1_flat = x1.reshape(B * L, C)
    h = fused_linear(x1_flat, p['fc1_w'], p['fc1_b'],
                     ln=(p['norm2_g'], p['norm2_b']), gelu=True)
    x2 = fused_linear(h, p['fc2_w'], p['fc2_b'], residual=x1_flat)
    return x2.reshape(B, L, C)


def patch_merging_fwd(p, x, H, W):
    B, L, C = x.shape
    x = x.reshape(B, H, W, C)
    if H % 2 == 1 or W % 2 == 1:
        x = jnp.pad(x, ((0, 0), (0, H % 2), (0, W % 2), (0, 0)))
    x0 = x[:, 0::2, 0::2, :]
    x1 = x[:, 1::2, 0::2, :]
    x2 = x[:, 0::2, 1::2, :]
    x3 = x[:, 1::2, 1::2, :]
    xc = jnp.concatenate([x0, x1, x2, x3], -1)
    Hn, Wn = xc.shape[1], xc.shape[2]
    xf = xc.reshape(B * Hn * Wn, 4 * C)
    # LayerNorm fused into the bias-free reduction matmul (no zero-bias stream)
    y = fused_linear(xf, p['red_w'], None, ln=(p['norm_g'], p['norm_b']))
    return y.reshape(B, Hn * Wn, 2 * C)


def patch_embed_fwd(p, x, patch_size, embed_dim, patch_norm):
    B, Cin, H, W = x.shape
    ps = patch_size
    if W % ps != 0:
        x = jnp.pad(x, ((0, 0), (0, 0), (0, 0), (0, ps - W % ps)))
    if H % ps != 0:
        x = jnp.pad(x, ((0, 0), (0, 0), (0, ps - H % ps), (0, 0)))
    _, _, H2, W2 = x.shape
    Wh, Ww = H2 // ps, W2 // ps
    # im2col: patch vector ordered (ic, kh, kw) to match PyTorch conv weight layout
    xp = x.reshape(B, Cin, Wh, ps, Ww, ps).transpose(0, 2, 4, 1, 3, 5).reshape(B * Wh * Ww, Cin * ps * ps)
    y = fused_linear(xp, p['proj_w'], p['proj_b'])
    if patch_norm:
        y = layernorm_pallas(y, p['norm_g'], p['norm_b'])
    y = y.reshape(B, Wh, Ww, embed_dim).transpose(0, 3, 1, 2)             # NCHW
    return y, Wh, Ww


def swin_forward(params, x, cfg):
    x_embed, Wh, Ww = patch_embed_fwd(params['patch_embed'], x,
                                      cfg['patch_size'], cfg['embed_dim'], cfg['patch_norm'])
    # ape=False; pos_drop / dropout / drop_path are identity in eval.
    outs = [x_embed]
    B = x_embed.shape[0]
    C = cfg['embed_dim']
    xt = x_embed.reshape(B, C, Wh * Ww).transpose(0, 2, 1)                # (B, L, C)

    num_layers = len(cfg['depths'])
    for i in range(num_layers):
        lp = params['layers'][i]
        depth = cfg['depths'][i]
        nh = cfg['num_heads'][i]
        ws = cfg['window_size']
        H, W = Wh, Ww
        attn_mask = compute_attn_mask(H, W, ws, ws // 2)

        for d in range(depth):
            shift = 0 if d % 2 == 0 else ws // 2
            xt = swin_block_fwd(lp['blocks'][d], xt, H, W, attn_mask, nh, ws, shift)

        x_out = xt
        if i < num_layers - 1:
            x_next = patch_merging_fwd(lp['downsample'], xt, H, W)
            Wh, Ww = (H + 1) // 2, (W + 1) // 2
        else:
            x_next = xt
            Wh, Ww = H, W

        if i in cfg['out_indices']:
            nf = int(cfg['embed_dim'] * 2 ** i)
            onp = params['out_norms'][i]
            y = layernorm_pallas(x_out.reshape(B * H * W, nf), onp['g'], onp['b'])
            outs.append(y.reshape(B, H, W, nf).transpose(0, 3, 1, 2))      # NCHW

        xt = x_next

    return tuple(outs)


# ----------------------------------------------------------------------------
# Deterministic parameter initialization (synthetic — no checkpoint load)
# ----------------------------------------------------------------------------
def init_params(cfg, key):
    keys = iter(jax.random.split(key, 512))

    def nrm(shape):
        return (jax.random.normal(next(keys), shape, jnp.float32) * 0.02).astype(jnp.float32)

    ps, cin, ed = cfg['patch_size'], cfg['in_chans'], cfg['embed_dim']
    ws = cfg['window_size']
    N = ws * ws
    rpi = make_relative_position_index(ws)                                # np (N, N)

    params = {
        'patch_embed': {
            'proj_w': nrm((cin * ps * ps, ed)),
            'proj_b': jnp.zeros((ed,), jnp.float32),
            'norm_g': jnp.ones((ed,), jnp.float32),
            'norm_b': jnp.zeros((ed,), jnp.float32),
        },
        'layers': [],
        'out_norms': {},
    }

    num_layers = len(cfg['depths'])
    for i in range(num_layers):
        dim = int(ed * 2 ** i)
        nh = cfg['num_heads'][i]
        hidden = int(dim * cfg['mlp_ratio'])
        blocks = []
        for _ in range(cfg['depths'][i]):
            rpb_table = nrm(((2 * ws - 1) * (2 * ws - 1), nh))
            # fold the (deterministic) table gather at init: (nH, N, N)
            rpb = rpb_table[jnp.asarray(rpi.reshape(-1))].reshape(N, N, nh).transpose(2, 0, 1)
            blocks.append({
                'norm1_g': jnp.ones((dim,), jnp.float32),
                'norm1_b': jnp.zeros((dim,), jnp.float32),
                'attn': {
                    'qkv_w': nrm((dim, 3 * dim)),
                    'qkv_b': jnp.zeros((3 * dim,), jnp.float32),
                    'proj_w': nrm((dim, dim)),
                    'proj_b': jnp.zeros((dim,), jnp.float32),
                    'rpb': rpb,
                },
                'norm2_g': jnp.ones((dim,), jnp.float32),
                'norm2_b': jnp.zeros((dim,), jnp.float32),
                'fc1_w': nrm((dim, hidden)),
                'fc1_b': jnp.zeros((hidden,), jnp.float32),
                'fc2_w': nrm((hidden, dim)),
                'fc2_b': jnp.zeros((dim,), jnp.float32),
            })
        layer = {'blocks': blocks}
        if i < num_layers - 1:
            layer['downsample'] = {
                'norm_g': jnp.ones((4 * dim,), jnp.float32),
                'norm_b': jnp.zeros((4 * dim,), jnp.float32),
                'red_w': nrm((4 * dim, 2 * dim)),
            }
        params['layers'].append(layer)

        if i in cfg['out_indices']:
            params['out_norms'][i] = {
                'g': jnp.ones((dim,), jnp.float32),
                'b': jnp.zeros((dim,), jnp.float32),
            }

    return params


# ----------------------------------------------------------------------------
# main
# ----------------------------------------------------------------------------
if __name__ == "__main__":
    cfg = dict(
        patch_size=4,
        in_chans=3,
        embed_dim=32,
        depths=[2, 2],
        num_heads=[2, 4],
        window_size=4,
        mlp_ratio=2.0,
        patch_norm=True,
        out_indices=(0, 1),
    )

    key = jax.random.PRNGKey(0)
    kx, kp = jax.random.split(key)
    x = jax.random.normal(kx, (2, 3, 32, 32), dtype=jnp.float32)  # NCHW like the PyTorch module

    params = init_params(cfg, kp)

    outs = swin_forward(params, x, cfg)
    outs = jax.block_until_ready(outs)

    # sanity on shapes (patch-embed out + one per out_index)
    assert outs[0].shape == (2, 32, 8, 8)
    assert outs[1].shape == (2, 32, 8, 8)
    assert outs[2].shape == (2, 64, 4, 4)
    assert all(bool(jnp.all(jnp.isfinite(o))) for o in outs)

    print("KERNEL_OK")
</pallas_src>

<mosaic_0001>
module attributes {stable_mosaic.version = 11 : i64} {
  func.func @kernel(%arg0: i32, %arg1: i32, %arg2: memref<128x48xf32, #tpu.memory_space<vmem>>, %arg3: memref<48x32xbf16, #tpu.memory_space<vmem>>, %arg4: memref<1x32xf32, #tpu.memory_space<vmem>>, %arg5: memref<128x32xf32, #tpu.memory_space<vmem>>) attributes {dimension_semantics = [#tpu.dimension_semantics<parallel>, #tpu.dimension_semantics<parallel>], iteration_bounds = array<i64: 1, 1>, scalar_prefetch = 0 : i64, scratch_operands = 0 : i64, tpu.core_type = #tpu.core_type<tc>, window_params = [{transform_indices = @transform_0, window_bounds = array<i64: 128, 48>}, {transform_indices = @transform_1, window_bounds = array<i64: 48, 32>}, {transform_indices = @transform_2, window_bounds = array<i64: 1, 32>}, {transform_indices = @transform_3, window_bounds = array<i64: 128, 32>}]} {
    %c0 = arith.constant 0 : index
    %c0_0 = arith.constant 0 : index
    %0 = vector.load %arg2[%c0, %c0_0] : memref<128x48xf32, #tpu.memory_space<vmem>>, vector<128x48xf32>
    %1 = arith.truncf %0 : vector<128x48xf32> to vector<128x48xbf16>
    %c0_1 = arith.constant 0 : index
    %c0_2 = arith.constant 0 : index
    %2 = vector.load %arg3[%c0_1, %c0_2] : memref<48x32xbf16, #tpu.memory_space<vmem>>, vector<48x32xbf16>
    %cst = arith.constant dense<0.000000e+00> : vector<128x32xf32>
    %3 = tpu.matmul %1, %2, %cst {dimension_numbers = #tpu.dot_dimension_numbers<[1], [0], [0], [1], [0, 0, 1, 1], [], []>} : vector<128x48xbf16>, vector<48x32xbf16>, vector<128x32xf32> -> vector<128x32xf32>
    %c0_3 = arith.constant 0 : index
    %c0_4 = arith.constant 0 : index
    %4 = vector.load %arg4[%c0_3, %c0_4] : memref<1x32xf32, #tpu.memory_space<vmem>>, vector<1x32xf32>
    %5 = vector.broadcast %4 : vector<1x32xf32> to vector<128x32xf32>
    %6 = arith.addf %3, %5 : vector<128x32xf32>
    %c0_5 = arith.constant 0 : index
    %c0_6 = arith.constant 0 : index
    %7 = vector.load %arg5[%c0_5, %c0_6] : memref<128x32xf32, #tpu.memory_space<vmem>>, vector<128x32xf32>
    tpu.vector_store %arg5[%c0_5, %c0_6], %6 {strides = array<i32>} : memref<128x32xf32, #tpu.memory_space<vmem>>, vector<128x32xf32>,
    return
  }
  func.func @transform_0(%arg0: i32, %arg1: i32) -> (i32, i32) {
    %c0_i32 = arith.constant 0 : i32
    %c0_i32_0 = arith.constant 0 : i32
    return %arg0, %c0_i32 : i32, i32
  }
  func.func @transform_1(%arg0: i32, %arg1: i32) -> (i32, i32) {
    %c0_i32 = arith.constant 0 : i32
    %c0_i32_0 = arith.constant 0 : i32
    return %c0_i32, %arg1 : i32, i32
  }
  func.func @transform_2(%arg0: i32, %arg1: i32) -> (i32, i32) {
    %c0_i32 = arith.constant 0 : i32
    %c0_i32_0 = arith.constant 0 : i32
    return %c0_i32, %arg1 : i32, i32
  }
  func.func @transform_3(%arg0: i32, %arg1: i32) -> (i32, i32) {
    %c0_i32 = arith.constant 0 : i32
    return %arg0, %arg1 : i32, i32
  }
}

</mosaic_0001>

<bundles_post_ra>
// kernel: tpu_custom_call.1
= control target key start
LH: loop header
LB: loop body
LE: loop exit
PB: predicated region body
PF: predicated region fallthrough
CT: control target
= control target key end

     0   :  { %vm70_vm0 = vcmask 392192   ;;  %vm192_vm1 = vcmask 261120   ;;  %s419_s1 = inlined_call_operand.vmem [shape: bf16[48,32], index: 1, kind: input, shape index: {}]   ;;  %s420_s0 = inlined_call_operand.vmem [shape: f32[128,48], index: 0, kind: input, shape index: {}]   ;;  %s421_s2 = inlined_call_operand.vmem [shape: f32[1,32], index: 2, kind: input, shape index: {}]   ;;  %s422_s3 = inlined_call_operand.vmem [shape: f32[128,32], index: 3, kind: output, shape index: {}]  }
   0x1   :  { %v264_v0 = vld [vmem:[%s419_s1 + $0x10] sm:$0xff]   ;;  %v265_v1 = vld [vmem:[%s419_s1 + $0x8] sm:$0xff]   ;;  %v15_v2 = vld [vmem:[%s420_s0] sm:$0xff] }
   0x2   :  { %236 = vmatprep.subr.bf16.mxu0 %v264_v0  ;;  %258 = vmatprep.subr.bf16.mxu1 %v264_v0  ;;  %v16_v3 = vld [vmem:[%s420_s0 + $0x8] sm:$0xff]  ;;  %v23_v4 = vld [vmem:[%s420_s0 + $0x40] sm:$0xff]  ;;  %v17_v9 = vld [vmem:[%s420_s0 + $0x10] sm:$0xff] }
   0x3   :  { %237 = vmatpush3.bf16.msra.mxu0 %v264_v0  ;;  %261 = vmatpush3.bf16.msra.mxu1 %v264_v0  ;;  %v266_v5 = vld [vmem:[%s419_s1] sm:$0xff]   ;;  %v31_v6 = vpack.c.bf16 %v16_v3, %v15_v2  ;;  %v24_v7 = vld [vmem:[%s420_s0 + $0x48] sm:$0xff]  ;;  %v18_v10 = vld [vmem:[%s420_s0 + $0x18] sm:$0xff] }
   0x4   :  { %238 = vmatprep.subr.bf16.mxu0 %v265_v1  ;;  %259 = vmatprep.subr.bf16.mxu1 %v265_v1  ;;  %v35_v8 = vpack.c.bf16 %v24_v7, %v23_v4  ;;  %v25_v11 = vld [vmem:[%s420_s0 + $0x50] sm:$0xff]  ;;  %v26_v12 = vld [vmem:[%s420_s0 + $0x58] sm:$0xff]  ;;  %v19_v13 = vld [vmem:[%s420_s0 + $0x20] sm:$0xff]  ;;  %v32_v17 = vpack.c.bf16 %v18_v10, %v17_v9 }
   0x5   :  { %242 = vmatprep.mubr.msk.bf16.mxu0 %vm70_vm0, %v31_v6  ;;  %v20_v14 = vld [vmem:[%s420_s0 + $0x28] sm:$0xff]  ;;  %v27_v15 = vld [vmem:[%s420_s0 + $0x60] sm:$0xff]  ;;  %v36_v18 = vpack.c.bf16 %v26_v12, %v25_v11  ;;  %v21_v21 = vld [vmem:[%s420_s0 + $0x30] sm:$0xff] }
   0x6   :  { %v28_v16 = vld [vmem:[%s420_s0 + $0x68] sm:$0xff]  ;;  %250 = vmatprep.mubr.msk.bf16.mxu1 %vm70_vm0, %v35_v8  ;;  %v33_v19 = vpack.c.bf16 %v20_v14, %v19_v13  ;;  %v22_v22 = vld [vmem:[%s420_s0 + $0x38] sm:$0xff]  ;;  %v29_v23 = vld [vmem:[%s420_s0 + $0x70] sm:$0xff] }
   0x7   :  { %239 = vmatpush3.bf16.msra.mxu0 %v265_v1  ;;  %262 = vmatpush3.bf16.msra.mxu1 %v265_v1  ;;  %v37_v20 = vpack.c.bf16 %v28_v16, %v27_v15  ;;  %v30_v24 = vld [vmem:[%s420_s0 + $0x78] sm:$0xff]  ;;  %v34_v25 = vpack.c.bf16 %v22_v22, %v21_v21  ;;  %v213_v27 = vld [vmem:[%s421_s2] ss:$0 sm:$0xff] }
   0x8   :  { %240 = vmatprep.subr.bf16.mxu0 %v266_v5  ;;  %260 = vmatprep.subr.bf16.mxu1 %v266_v5  ;;  %v38_v26 = vpack.c.bf16 %v30_v24, %v29_v23 }
   0xb   :  { %241 = vmatpush3.bf16.msra.mxu0 %v266_v5  ;;  %263 = vmatpush3.bf16.msra.mxu1 %v266_v5 }
   0xe   :  { %243 = vmatmul.mubr.msk.bf16.vlgmr.msra.gmra.mxu0 %vm70_vm0, %v32_v17  ;;  %251 = vmatmul.mubr.msk.bf16.vlgmr.msra.gmra.mxu1 %vm70_vm0, %v36_v18 }
   0xf   :  { %246 = vmatprep.mubr.msk.bf16.mxu0 %vm70_vm0, %v33_v19  ;;  %254 = vmatprep.mubr.msk.bf16.mxu1 %vm70_vm0, %v37_v20 }
  0x16   :  { %247 = vmatmul.mubr.msk.bf16.gmra.mxu0 %vm70_vm0, %v34_v25  ;;  %255 = vmatmul.mubr.msk.bf16.gmra.mxu1 %vm70_vm0, %v38_v26 }
  0xce   :  { %v244_v28 = vpop.f32.mrf.mxu0  ;;  %v252_v29 = vpop.f32.mrf.mxu1 }
  0xcf   :  { %v138_v30 = vadd.f32 %v244_v28, %v213_v27  ;;  %v170_v31 = vadd.f32 %v252_v29, %v213_v27 }
  0xd0   :  { %v129_v32 = vpop.f32.mrf.mxu0  ;;  %v161_v33 = vpop.f32.mrf.mxu1 }
  0xd1   :  { %195 = vst.msk [vmem:[%s422_s3 + $0x10] sm:$0xff] %vm192_vm1, %v138_v30  ;;  %203 = vst.msk [vmem:[%s422_s3 + $0x50] sm:$0xff] %vm192_vm1, %v170_v31  ;;  %v130_v34 = vadd.f32 %v213_v27, %v129_v32  ;;  %v162_v35 = vadd.f32 %v213_v27, %v161_v33 }
  0xd2   :  { %v245_v36 = vpop.f32.mrf.mxu0  ;;  %v253_v37 = vpop.f32.mrf.mxu1 }
  0xd3   :  { %193 = vst.msk [vmem:[%s422_s3] sm:$0xff] %vm192_vm1, %v130_v34  ;;  %201 = vst.msk [vmem:[%s422_s3 + $0x40] sm:$0xff] %vm192_vm1, %v162_v35  ;;  %v141_v38 = vadd.f32 %v245_v36, %v213_v27  ;;  %v173_v39 = vadd.f32 %v253_v37, %v213_v27 }
  0xd4   :  { %v132_v40 = vpop.f32.mrf.mxu0  ;;  %v164_v41 = vpop.f32.mrf.mxu1 }
  0xd5   :  { %196 = vst.msk [vmem:[%s422_s3 + $0x18] sm:$0xff] %vm192_vm1, %v141_v38  ;;  %204 = vst.msk [vmem:[%s422_s3 + $0x58] sm:$0xff] %vm192_vm1, %v173_v39  ;;  %v133_v42 = vadd.f32 %v213_v27, %v132_v40  ;;  %v165_v43 = vadd.f32 %v213_v27, %v164_v41 }
  0xd6   :  { %v248_v44 = vpop.f32.mrf.mxu0  ;;  %v256_v45 = vpop.f32.mrf.mxu1 }
  0xd7   :  { %194 = vst.msk [vmem:[%s422_s3 + $0x8] sm:$0xff] %vm192_vm1, %v133_v42  ;;  %202 = vst.msk [vmem:[%s422_s3 + $0x48] sm:$0xff] %vm192_vm1, %v165_v43  ;;  %v154_v46 = vadd.f32 %v248_v44, %v213_v27  ;;  %v186_v47 = vadd.f32 %v256_v45, %v213_v27 }
  0xd8   :  { %v145_v48 = vpop.f32.mrf.mxu0  ;;  %v177_v49 = vpop.f32.mrf.mxu1 }
  0xd9   :  { %199 = vst.msk [vmem:[%s422_s3 + $0x30] sm:$0xff] %vm192_vm1, %v154_v46  ;;  %207 = vst.msk [vmem:[%s422_s3 + $0x70] sm:$0xff] %vm192_vm1, %v186_v47  ;;  %v146_v50 = vadd.f32 %v213_v27, %v145_v48  ;;  %v178_v51 = vadd.f32 %v213_v27, %v177_v49 }
  0xda   :  { %v249_v52 = vpop.f32.mrf.mxu0  ;;  %v257_v53 = vpop.f32.mrf.mxu1 }
  0xdb   :  { %197 = vst.msk [vmem:[%s422_s3 + $0x20] sm:$0xff] %vm192_vm1, %v146_v50  ;;  %205 = vst.msk [vmem:[%s422_s3 + $0x60] sm:$0xff] %vm192_vm1, %v178_v51  ;;  %v157_v54 = vadd.f32 %v249_v52, %v213_v27  ;;  %v189_v55 = vadd.f32 %v257_v53, %v213_v27 }
  0xdc   :  { %v148_v56 = vpop.f32.mrf.mxu0  ;;  %v180_v57 = vpop.f32.mrf.mxu1 }
  0xdd   :  { %200 = vst.msk [vmem:[%s422_s3 + $0x38] sm:$0xff] %vm192_vm1, %v157_v54  ;;  %208 = vst.msk [vmem:[%s422_s3 + $0x78] sm:$0xff] %vm192_vm1, %v189_v55  ;;  %v149_v58 = vadd.f32 %v213_v27, %v148_v56  ;;  %v181_v59 = vadd.f32 %v213_v27, %v180_v57 }
  0xdf   :  { %198 = vst.msk [vmem:[%s422_s3 + $0x28] sm:$0xff] %vm192_vm1, %v149_v58  ;;  %206 = vst.msk [vmem:[%s422_s3 + $0x68] sm:$0xff] %vm192_vm1, %v181_v59 }

</bundles_post_ra>
